<compile_context>
chip_gen: v6e
topology: v6e:2x2x1
jax: 0.10.0
libtpu: 0.0.40
codegen_flags: <defaults>
</compile_context>

<pallas_src>
import functools

import jax
import jax.numpy as jnp
from jax.experimental import pallas as pl
from jax.experimental.pallas import tpu as pltpu

_HIDDEN = 20  # lin1 output width


def _round_up(x: int, m: int) -> int:
    return ((x + m - 1) // m) * m


def _choose_tiling(n: int, *, max_lane_tile: int = 8192,
                   split_threshold_lanes: int = 2048) -> tuple[int, int]:
    """Pick (lane_tile, grid_steps) for a batch of n samples.

    The batch is folded as (8 sublanes, L lanes); L must be a multiple of 128.
    Padding is only to a multiple of 1024 samples (not a full tile), and once the
    problem is large enough the grid gets >=2 (even) steps so v7x's 2 TCs share it.
    """
    lanes = _round_up(max(n, 1), 8 * 128) // 8          # multiple of 128 lanes
    steps = pl.cdiv(lanes, max_lane_tile)               # cap per-step VMEM footprint
    if lanes >= split_threshold_lanes:
        steps = max(steps, 2)                           # give both v7x TCs work
    if steps > 1 and steps % 2:
        steps += 1                                      # balanced across 2 TCs
    t = _round_up(pl.cdiv(lanes, steps), 128)           # lane tile, multiple of 128
    return t, steps


def _mlp_kernel(tanh_dtype, x_ref, w1a_ref, w1b_ref, b1_ref, w2_ref, b2_ref, o_ref):
    """One batch tile of the 2 -> 20 -> tanh -> 1 MLP, batch folded over (sublane, lane).

    x_ref : (2, 8, T) f32 VMEM   input features, batch folded across sublane x lane
    w1a_ref:(20,)     f32 SMEM   lin1.weight[:, 0]
    w1b_ref:(20,)     f32 SMEM   lin1.weight[:, 1]
    b1_ref: (20,)     f32 SMEM   lin1.bias
    w2_ref: (20,)     f32 SMEM   lin2.weight[0, :]
    b2_ref: (1,)      f32 SMEM   lin2.bias
    o_ref : (8, T)    f32 VMEM   output, batch folded across sublane x lane
    """
    x0 = x_ref[0]                                   # (8, T)  feature 0
    x1 = x_ref[1]                                   # (8, T)  feature 1
    y = jnp.zeros_like(x0)                          # f32 accumulator (8, T)
    # Fully unrolled over the 20 hidden units: each is one dense (8, T) slab.
    for j in range(_HIDDEN):
        h = w1a_ref[j] * x0 + w1b_ref[j] * x1 + b1_ref[j]      # VPU scalar-bcast FMAs
        h = jnp.tanh(h.astype(tanh_dtype))                     # EUP (f32; bf16 opt-in)
        y = y + w2_ref[j] * h.astype(jnp.float32)              # VALU accumulate
    o_ref[...] = (y + b2_ref[0]).astype(o_ref.dtype)           # full 8-sublane store


def weight_model_forward(x, w1_torch, b1, w2_torch, b2, *,
                         max_lane_tile=8192, tanh_dtype=jnp.float32):
    """Pallas implementation of weightModel.forward.

    x:        (N, 2)   float32
    w1_torch: (20, 2)  float32  (PyTorch lin1.weight, (out, in))
    b1:       (20,)    float32
    w2_torch: (1, 20)  float32  (PyTorch lin2.weight, (out, in))
    b2:       (1,)     float32
    returns ((N, 1) float32, '')   -- mirrors the PyTorch return signature.

    `tanh_dtype=jnp.bfloat16` is a v6e/v7x-only speed option (no bf16 EUP on v5e,
    and it loosens accuracy to ~1e-3 relative); default f32 is exact everywhere.
    """
    n = x.shape[0]
    t, steps = _choose_tiling(n, max_lane_tile=max_lane_tile)
    lanes_pad = t * steps
    n_pad = 8 * lanes_pad

    # Single relayout pass: feature-major transpose + tail pad + fold over (8, L).
    # If the caller can hand over x feature-major / consume the folded (8, L) output,
    # these boundary copies disappear entirely (kernel-intrinsic traffic is 12 B/sample).
    x_t = jnp.pad(x.astype(jnp.float32).T,
                  ((0, 0), (0, n_pad - n))).reshape(2, 8, lanes_pad)

    w1 = w1_torch.astype(jnp.float32)                 # (20, 2)
    w1a = w1[:, 0]                                    # (20,)
    w1b = w1[:, 1]                                    # (20,)
    b1_s = b1.astype(jnp.float32).reshape(_HIDDEN)    # (20,)
    w2_s = w2_torch.astype(jnp.float32).reshape(_HIDDEN)  # (20,)
    b2_s = b2.astype(jnp.float32).reshape(1)          # (1,)

    kernel = functools.partial(_mlp_kernel, tanh_dtype)
    smem = pl.BlockSpec(memory_space=pltpu.MemorySpace.SMEM)

    out_t = pl.pallas_call(
        kernel,
        out_shape=jax.ShapeDtypeStruct((8, lanes_pad), jnp.float32),
        grid=(steps,),
        in_specs=[
            pl.BlockSpec((2, 8, t), lambda i: (0, 0, i)),   # x: tiled over lanes
            smem,                                           # w1[:, 0]
            smem,                                           # w1[:, 1]
            smem,                                           # b1
            smem,                                           # w2
            smem,                                           # b2
        ],
        out_specs=pl.BlockSpec((8, t), lambda i: (0, i)),
        compiler_params=pltpu.CompilerParams(
            dimension_semantics=("parallel",),   # shard batch tiles across TCs (v7x)
            vmem_limit_bytes=32 * 1024 * 1024,   # ~3 MiB working set -> big headroom
        ),
    )(x_t, w1a, w1b, b1_s, w2_s, b2_s)

    # Padded tail samples hold tanh(b1)@w2 + b2 garbage -> must slice to n here.
    out = out_t.reshape(-1)[:n].reshape(n, 1)
    return out, ""


def _reference(x, w1_torch, b1, w2_torch, b2):
    return jnp.tanh(x @ w1_torch.T + b1) @ w2_torch.T + b2


if __name__ == "__main__":
    key = jax.random.PRNGKey(0)
    k_x, k_w1, k_b1, k_w2, k_b2, k_x2 = jax.random.split(key, 6)

    w1_torch = jax.random.normal(k_w1, (20, 2), dtype=jnp.float32) * 0.5   # (out, in)
    b1 = jax.random.normal(k_b1, (20,), dtype=jnp.float32) * 0.1
    w2_torch = jax.random.normal(k_w2, (1, 20), dtype=jnp.float32) * 0.5   # (out, in)
    b2 = jax.random.normal(k_b2, (1,), dtype=jnp.float32) * 0.1

    # Small demo batch (single grid step).
    N = 8
    x = jax.random.normal(k_x, (N, 2), dtype=jnp.float32)
    out, _ = weight_model_forward(x, w1_torch, b1, w2_torch, b2)
    out = jax.block_until_ready(out)
    ref = _reference(x, w1_torch, b1, w2_torch, b2)
    assert out.shape == (N, 1)
    assert jnp.allclose(out, ref, atol=1e-5, rtol=1e-5)

    # Second small check exercising a multi-step grid and the tail-slice path.
    N2 = 2500
    x2 = jax.random.normal(k_x2, (N2, 2), dtype=jnp.float32)
    out2, _ = weight_model_forward(x2, w1_torch, b1, w2_torch, b2, max_lane_tile=128)
    out2 = jax.block_until_ready(out2)
    ref2 = _reference(x2, w1_torch, b1, w2_torch, b2)
    assert out2.shape == (N2, 1)
    assert jnp.allclose(out2, ref2, atol=1e-5, rtol=1e-5)

    print("KERNEL_OK")
</pallas_src>

<mosaic_0001>
module attributes {stable_mosaic.version = 11 : i64} {
  func.func @_mlp_kernel(%arg0: i32, %arg1: memref<2x8x128xf32, #tpu.memory_space<vmem>>, %arg2: memref<20xf32, #tpu.memory_space<smem>>, %arg3: memref<20xf32, #tpu.memory_space<smem>>, %arg4: memref<20xf32, #tpu.memory_space<smem>>, %arg5: memref<20xf32, #tpu.memory_space<smem>>, %arg6: memref<1xf32, #tpu.memory_space<smem>>, %arg7: memref<8x128xf32, #tpu.memory_space<vmem>>) attributes {dimension_semantics = [#tpu.dimension_semantics<parallel>], iteration_bounds = array<i64: 1>, scalar_prefetch = 0 : i64, scratch_operands = 0 : i64, tpu.core_type = #tpu.core_type<tc>, window_params = [{transform_indices = @transform_0, window_bounds = array<i64: 2, 8, 128>}, {transform_indices = @transform_1, window_bounds = array<i64: 20>}, {transform_indices = @transform_2, window_bounds = array<i64: 20>}, {transform_indices = @transform_3, window_bounds = array<i64: 20>}, {transform_indices = @transform_4, window_bounds = array<i64: 20>}, {transform_indices = @transform_5, window_bounds = array<i64: 1>}, {transform_indices = @transform_6, window_bounds = array<i64: 8, 128>}]} {
    %c0 = arith.constant 0 : index
    %c0_0 = arith.constant 0 : index
    %c0_1 = arith.constant 0 : index
    %0 = vector.load %arg1[%c0, %c0_0, %c0_1] : memref<2x8x128xf32, #tpu.memory_space<vmem>>, vector<1x8x128xf32>
    %1 = vector.shape_cast %0 : vector<1x8x128xf32> to vector<8x128xf32>
    %c1 = arith.constant 1 : index
    %c0_2 = arith.constant 0 : index
    %c0_3 = arith.constant 0 : index
    %2 = vector.load %arg1[%c1, %c0_2, %c0_3] : memref<2x8x128xf32, #tpu.memory_space<vmem>>, vector<1x8x128xf32>
    %3 = vector.shape_cast %2 : vector<1x8x128xf32> to vector<8x128xf32>
    %cst = arith.constant 0.000000e+00 : f32
    %4 = vector.broadcast %cst : f32 to vector<8x128xf32>
    %c0_4 = arith.constant 0 : index
    %5 = memref.load %arg2[%c0_4] : memref<20xf32, #tpu.memory_space<smem>>
    %6 = vector.broadcast %5 : f32 to vector<8x128xf32>
    %7 = arith.mulf %6, %1 : vector<8x128xf32>
    %c0_5 = arith.constant 0 : index
    %8 = memref.load %arg3[%c0_5] : memref<20xf32, #tpu.memory_space<smem>>
    %9 = vector.broadcast %8 : f32 to vector<8x128xf32>
    %10 = arith.mulf %9, %3 : vector<8x128xf32>
    %11 = arith.addf %7, %10 : vector<8x128xf32>
    %c0_6 = arith.constant 0 : index
    %12 = memref.load %arg4[%c0_6] : memref<20xf32, #tpu.memory_space<smem>>
    %13 = vector.broadcast %12 : f32 to vector<8x128xf32>
    %14 = arith.addf %11, %13 : vector<8x128xf32>
    %15 = math.tanh %14 : vector<8x128xf32>
    %c0_7 = arith.constant 0 : index
    %16 = memref.load %arg5[%c0_7] : memref<20xf32, #tpu.memory_space<smem>>
    %17 = vector.broadcast %16 : f32 to vector<8x128xf32>
    %18 = arith.mulf %17, %15 : vector<8x128xf32>
    %19 = arith.addf %4, %18 : vector<8x128xf32>
    %c1_8 = arith.constant 1 : index
    %20 = memref.load %arg2[%c1_8] : memref<20xf32, #tpu.memory_space<smem>>
    %21 = vector.broadcast %20 : f32 to vector<8x128xf32>
    %22 = arith.mulf %21, %1 : vector<8x128xf32>
    %c1_9 = arith.constant 1 : index
    %23 = memref.load %arg3[%c1_9] : memref<20xf32, #tpu.memory_space<smem>>
    %24 = vector.broadcast %23 : f32 to vector<8x128xf32>
    %25 = arith.mulf %24, %3 : vector<8x128xf32>
    %26 = arith.addf %22, %25 : vector<8x128xf32>
    %c1_10 = arith.constant 1 : index
    %27 = memref.load %arg4[%c1_10] : memref<20xf32, #tpu.memory_space<smem>>
    %28 = vector.broadcast %27 : f32 to vector<8x128xf32>
    %29 = arith.addf %26, %28 : vector<8x128xf32>
    %30 = math.tanh %29 : vector<8x128xf32>
    %c1_11 = arith.constant 1 : index
    %31 = memref.load %arg5[%c1_11] : memref<20xf32, #tpu.memory_space<smem>>
    %32 = vector.broadcast %31 : f32 to vector<8x128xf32>
    %33 = arith.mulf %32, %30 : vector<8x128xf32>
    %34 = arith.addf %19, %33 : vector<8x128xf32>
    %c2 = arith.constant 2 : index
    %35 = memref.load %arg2[%c2] : memref<20xf32, #tpu.memory_space<smem>>
    %36 = vector.broadcast %35 : f32 to vector<8x128xf32>
    %37 = arith.mulf %36, %1 : vector<8x128xf32>
    %c2_12 = arith.constant 2 : index
    %38 = memref.load %arg3[%c2_12] : memref<20xf32, #tpu.memory_space<smem>>
    %39 = vector.broadcast %38 : f32 to vector<8x128xf32>
    %40 = arith.mulf %39, %3 : vector<8x128xf32>
    %41 = arith.addf %37, %40 : vector<8x128xf32>
    %c2_13 = arith.constant 2 : index
    %42 = memref.load %arg4[%c2_13] : memref<20xf32, #tpu.memory_space<smem>>
    %43 = vector.broadcast %42 : f32 to vector<8x128xf32>
    %44 = arith.addf %41, %43 : vector<8x128xf32>
    %45 = math.tanh %44 : vector<8x128xf32>
    %c2_14 = arith.constant 2 : index
    %46 = memref.load %arg5[%c2_14] : memref<20xf32, #tpu.memory_space<smem>>
    %47 = vector.broadcast %46 : f32 to vector<8x128xf32>
    %48 = arith.mulf %47, %45 : vector<8x128xf32>
    %49 = arith.addf %34, %48 : vector<8x128xf32>
    %c3 = arith.constant 3 : index
    %50 = memref.load %arg2[%c3] : memref<20xf32, #tpu.memory_space<smem>>
    %51 = vector.broadcast %50 : f32 to vector<8x128xf32>
    %52 = arith.mulf %51, %1 : vector<8x128xf32>
    %c3_15 = arith.constant 3 : index
    %53 = memref.load %arg3[%c3_15] : memref<20xf32, #tpu.memory_space<smem>>
    %54 = vector.broadcast %53 : f32 to vector<8x128xf32>
    %55 = arith.mulf %54, %3 : vector<8x128xf32>
    %56 = arith.addf %52, %55 : vector<8x128xf32>
    %c3_16 = arith.constant 3 : index
    %57 = memref.load %arg4[%c3_16] : memref<20xf32, #tpu.memory_space<smem>>
    %58 = vector.broadcast %57 : f32 to vector<8x128xf32>
    %59 = arith.addf %56, %58 : vector<8x128xf32>
    %60 = math.tanh %59 : vector<8x128xf32>
    %c3_17 = arith.constant 3 : index
    %61 = memref.load %arg5[%c3_17] : memref<20xf32, #tpu.memory_space<smem>>
    %62 = vector.broadcast %61 : f32 to vector<8x128xf32>
    %63 = arith.mulf %62, %60 : vector<8x128xf32>
    %64 = arith.addf %49, %63 : vector<8x128xf32>
    %c4 = arith.constant 4 : index
    %65 = memref.load %arg2[%c4] : memref<20xf32, #tpu.memory_space<smem>>
    %66 = vector.broadcast %65 : f32 to vector<8x128xf32>
    %67 = arith.mulf %66, %1 : vector<8x128xf32>
    %c4_18 = arith.constant 4 : index
    %68 = memref.load %arg3[%c4_18] : memref<20xf32, #tpu.memory_space<smem>>
    %69 = vector.broadcast %68 : f32 to vector<8x128xf32>
    %70 = arith.mulf %69, %3 : vector<8x128xf32>
    %71 = arith.addf %67, %70 : vector<8x128xf32>
    %c4_19 = arith.constant 4 : index
    %72 = memref.load %arg4[%c4_19] : memref<20xf32, #tpu.memory_space<smem>>
    %73 = vector.broadcast %72 : f32 to vector<8x128xf32>
    %74 = arith.addf %71, %73 : vector<8x128xf32>
    %75 = math.tanh %74 : vector<8x128xf32>
    %c4_20 = arith.constant 4 : index
    %76 = memref.load %arg5[%c4_20] : memref<20xf32, #tpu.memory_space<smem>>
    %77 = vector.broadcast %76 : f32 to vector<8x128xf32>
    %78 = arith.mulf %77, %75 : vector<8x128xf32>
    %79 = arith.addf %64, %78 : vector<8x128xf32>
    %c5 = arith.constant 5 : index
    %80 = memref.load %arg2[%c5] : memref<20xf32, #tpu.memory_space<smem>>
    %81 = vector.broadcast %80 : f32 to vector<8x128xf32>
    %82 = arith.mulf %81, %1 : vector<8x128xf32>
    %c5_21 = arith.constant 5 : index
    %83 = memref.load %arg3[%c5_21] : memref<20xf32, #tpu.memory_space<smem>>
    %84 = vector.broadcast %83 : f32 to vector<8x128xf32>
    %85 = arith.mulf %84, %3 : vector<8x128xf32>
    %86 = arith.addf %82, %85 : vector<8x128xf32>
    %c5_22 = arith.constant 5 : index
    %87 = memref.load %arg4[%c5_22] : memref<20xf32, #tpu.memory_space<smem>>
    %88 = vector.broadcast %87 : f32 to vector<8x128xf32>
    %89 = arith.addf %86, %88 : vector<8x128xf32>
    %90 = math.tanh %89 : vector<8x128xf32>
    %c5_23 = arith.constant 5 : index
    %91 = memref.load %arg5[%c5_23] : memref<20xf32, #tpu.memory_space<smem>>
    %92 = vector.broadcast %91 : f32 to vector<8x128xf32>
    %93 = arith.mulf %92, %90 : vector<8x128xf32>
    %94 = arith.addf %79, %93 : vector<8x128xf32>
    %c6 = arith.constant 6 : index
    %95 = memref.load %arg2[%c6] : memref<20xf32, #tpu.memory_space<smem>>
    %96 = vector.broadcast %95 : f32 to vector<8x128xf32>
    %97 = arith.mulf %96, %1 : vector<8x128xf32>
    %c6_24 = arith.constant 6 : index
    %98 = memref.load %arg3[%c6_24] : memref<20xf32, #tpu.memory_space<smem>>
    %99 = vector.broadcast %98 : f32 to vector<8x128xf32>
    %100 = arith.mulf %99, %3 : vector<8x128xf32>
    %101 = arith.addf %97, %100 : vector<8x128xf32>
    %c6_25 = arith.constant 6 : index
    %102 = memref.load %arg4[%c6_25] : memref<20xf32, #tpu.memory_space<smem>>
    %103 = vector.broadcast %102 : f32 to vector<8x128xf32>
    %104 = arith.addf %101, %103 : vector<8x128xf32>
    %105 = math.tanh %104 : vector<8x128xf32>
    %c6_26 = arith.constant 6 : index
    %106 = memref.load %arg5[%c6_26] : memref<20xf32, #tpu.memory_space<smem>>
    %107 = vector.broadcast %106 : f32 to vector<8x128xf32>
    %108 = arith.mulf %107, %105 : vector<8x128xf32>
    %109 = arith.addf %94, %108 : vector<8x128xf32>
    %c7 = arith.constant 7 : index
    %110 = memref.load %arg2[%c7] : memref<20xf32, #tpu.memory_space<smem>>
    %111 = vector.broadcast %110 : f32 to vector<8x128xf32>
    %112 = arith.mulf %111, %1 : vector<8x128xf32>
    %c7_27 = arith.constant 7 : index
    %113 = memref.load %arg3[%c7_27] : memref<20xf32, #tpu.memory_space<smem>>
    %114 = vector.broadcast %113 : f32 to vector<8x128xf32>
    %115 = arith.mulf %114, %3 : vector<8x128xf32>
    %116 = arith.addf %112, %115 : vector<8x128xf32>
    %c7_28 = arith.constant 7 : index
    %117 = memref.load %arg4[%c7_28] : memref<20xf32, #tpu.memory_space<smem>>
    %118 = vector.broadcast %117 : f32 to vector<8x128xf32>
    %119 = arith.addf %116, %118 : vector<8x128xf32>
    %120 = math.tanh %119 : vector<8x128xf32>
    %c7_29 = arith.constant 7 : index
    %121 = memref.load %arg5[%c7_29] : memref<20xf32, #tpu.memory_space<smem>>
    %122 = vector.broadcast %121 : f32 to vector<8x128xf32>
    %123 = arith.mulf %122, %120 : vector<8x128xf32>
    %124 = arith.addf %109, %123 : vector<8x128xf32>
    %c8 = arith.constant 8 : index
    %125 = memref.load %arg2[%c8] : memref<20xf32, #tpu.memory_space<smem>>
    %126 = vector.broadcast %125 : f32 to vector<8x128xf32>
    %127 = arith.mulf %126, %1 : vector<8x128xf32>
    %c8_30 = arith.constant 8 : index
    %128 = memref.load %arg3[%c8_30] : memref<20xf32, #tpu.memory_space<smem>>
    %129 = vector.broadcast %128 : f32 to vector<8x128xf32>
    %130 = arith.mulf %129, %3 : vector<8x128xf32>
    %131 = arith.addf %127, %130 : vector<8x128xf32>
    %c8_31 = arith.constant 8 : index
    %132 = memref.load %arg4[%c8_31] : memref<20xf32, #tpu.memory_space<smem>>
    %133 = vector.broadcast %132 : f32 to vector<8x128xf32>
    %134 = arith.addf %131, %133 : vector<8x128xf32>
    %135 = math.tanh %134 : vector<8x128xf32>
    %c8_32 = arith.constant 8 : index
    %136 = memref.load %arg5[%c8_32] : memref<20xf32, #tpu.memory_space<smem>>
    %137 = vector.broadcast %136 : f32 to vector<8x128xf32>
    %138 = arith.mulf %137, %135 : vector<8x128xf32>
    %139 = arith.addf %124, %138 : vector<8x128xf32>
    %c9 = arith.constant 9 : index
    %140 = memref.load %arg2[%c9] : memref<20xf32, #tpu.memory_space<smem>>
    %141 = vector.broadcast %140 : f32 to vector<8x128xf32>
    %142 = arith.mulf %141, %1 : vector<8x128xf32>
    %c9_33 = arith.constant 9 : index
    %143 = memref.load %arg3[%c9_33] : memref<20xf32, #tpu.memory_space<smem>>
    %144 = vector.broadcast %143 : f32 to vector<8x128xf32>
    %145 = arith.mulf %144, %3 : vector<8x128xf32>
    %146 = arith.addf %142, %145 : vector<8x128xf32>
    %c9_34 = arith.constant 9 : index
    %147 = memref.load %arg4[%c9_34] : memref<20xf32, #tpu.memory_space<smem>>
    %148 = vector.broadcast %147 : f32 to vector<8x128xf32>
    %149 = arith.addf %146, %148 : vector<8x128xf32>
    %150 = math.tanh %149 : vector<8x128xf32>
    %c9_35 = arith.constant 9 : index
    %151 = memref.load %arg5[%c9_35] : memref<20xf32, #tpu.memory_space<smem>>
    %152 = vector.broadcast %151 : f32 to vector<8x128xf32>
    %153 = arith.mulf %152, %150 : vector<8x128xf32>
    %154 = arith.addf %139, %153 : vector<8x128xf32>
    %c10 = arith.constant 10 : index
    %155 = memref.load %arg2[%c10] : memref<20xf32, #tpu.memory_space<smem>>
    %156 = vector.broadcast %155 : f32 to vector<8x128xf32>
    %157 = arith.mulf %156, %1 : vector<8x128xf32>
    %c10_36 = arith.constant 10 : index
    %158 = memref.load %arg3[%c10_36] : memref<20xf32, #tpu.memory_space<smem>>
    %159 = vector.broadcast %158 : f32 to vector<8x128xf32>
    %160 = arith.mulf %159, %3 : vector<8x128xf32>
    %161 = arith.addf %157, %160 : vector<8x128xf32>
    %c10_37 = arith.constant 10 : index
    %162 = memref.load %arg4[%c10_37] : memref<20xf32, #tpu.memory_space<smem>>
    %163 = vector.broadcast %162 : f32 to vector<8x128xf32>
    %164 = arith.addf %161, %163 : vector<8x128xf32>
    %165 = math.tanh %164 : vector<8x128xf32>
    %c10_38 = arith.constant 10 : index
    %166 = memref.load %arg5[%c10_38] : memref<20xf32, #tpu.memory_space<smem>>
    %167 = vector.broadcast %166 : f32 to vector<8x128xf32>
    %168 = arith.mulf %167, %165 : vector<8x128xf32>
    %169 = arith.addf %154, %168 : vector<8x128xf32>
    %c11 = arith.constant 11 : index
    %170 = memref.load %arg2[%c11] : memref<20xf32, #tpu.memory_space<smem>>
    %171 = vector.broadcast %170 : f32 to vector<8x128xf32>
    %172 = arith.mulf %171, %1 : vector<8x128xf32>
    %c11_39 = arith.constant 11 : index
    %173 = memref.load %arg3[%c11_39] : memref<20xf32, #tpu.memory_space<smem>>
    %174 = vector.broadcast %173 : f32 to vector<8x128xf32>
    %175 = arith.mulf %174, %3 : vector<8x128xf32>
    %176 = arith.addf %172, %175 : vector<8x128xf32>
    %c11_40 = arith.constant 11 : index
    %177 = memref.load %arg4[%c11_40] : memref<20xf32, #tpu.memory_space<smem>>
    %178 = vector.broadcast %177 : f32 to vector<8x128xf32>
    %179 = arith.addf %176, %178 : vector<8x128xf32>
    %180 = math.tanh %179 : vector<8x128xf32>
    %c11_41 = arith.constant 11 : index
    %181 = memref.load %arg5[%c11_41] : memref<20xf32, #tpu.memory_space<smem>>
    %182 = vector.broadcast %181 : f32 to vector<8x128xf32>
    %183 = arith.mulf %182, %180 : vector<8x128xf32>
    %184 = arith.addf %169, %183 : vector<8x128xf32>
    %c12 = arith.constant 12 : index
    %185 = memref.load %arg2[%c12] : memref<20xf32, #tpu.memory_space<smem>>
    %186 = vector.broadcast %185 : f32 to vector<8x128xf32>
    %187 = arith.mulf %186, %1 : vector<8x128xf32>
    %c12_42 = arith.constant 12 : index
    %188 = memref.load %arg3[%c12_42] : memref<20xf32, #tpu.memory_space<smem>>
    %189 = vector.broadcast %188 : f32 to vector<8x128xf32>
    %190 = arith.mulf %189, %3 : vector<8x128xf32>
    %191 = arith.addf %187, %190 : vector<8x128xf32>
    %c12_43 = arith.constant 12 : index
    %192 = memref.load %arg4[%c12_43] : memref<20xf32, #tpu.memory_space<smem>>
    %193 = vector.broadcast %192 : f32 to vector<8x128xf32>
    %194 = arith.addf %191, %193 : vector<8x128xf32>
    %195 = math.tanh %194 : vector<8x128xf32>
    %c12_44 = arith.constant 12 : index
    %196 = memref.load %arg5[%c12_44] : memref<20xf32, #tpu.memory_space<smem>>
    %197 = vector.broadcast %196 : f32 to vector<8x128xf32>
    %198 = arith.mulf %197, %195 : vector<8x128xf32>
    %199 = arith.addf %184, %198 : vector<8x128xf32>
    %c13 = arith.constant 13 : index
    %200 = memref.load %arg2[%c13] : memref<20xf32, #tpu.memory_space<smem>>
    %201 = vector.broadcast %200 : f32 to vector<8x128xf32>
    %202 = arith.mulf %201, %1 : vector<8x128xf32>
    %c13_45 = arith.constant 13 : index
    %203 = memref.load %arg3[%c13_45] : memref<20xf32, #tpu.memory_space<smem>>
    %204 = vector.broadcast %203 : f32 to vector<8x128xf32>
    %205 = arith.mulf %204, %3 : vector<8x128xf32>
    %206 = arith.addf %202, %205 : vector<8x128xf32>
    %c13_46 = arith.constant 13 : index
    %207 = memref.load %arg4[%c13_46] : memref<20xf32, #tpu.memory_space<smem>>
    %208 = vector.broadcast %207 : f32 to vector<8x128xf32>
    %209 = arith.addf %206, %208 : vector<8x128xf32>
    %210 = math.tanh %209 : vector<8x128xf32>
    %c13_47 = arith.constant 13 : index
    %211 = memref.load %arg5[%c13_47] : memref<20xf32, #tpu.memory_space<smem>>
    %212 = vector.broadcast %211 : f32 to vector<8x128xf32>
    %213 = arith.mulf %212, %210 : vector<8x128xf32>
    %214 = arith.addf %199, %213 : vector<8x128xf32>
    %c14 = arith.constant 14 : index
    %215 = memref.load %arg2[%c14] : memref<20xf32, #tpu.memory_space<smem>>
    %216 = vector.broadcast %215 : f32 to vector<8x128xf32>
    %217 = arith.mulf %216, %1 : vector<8x128xf32>
    %c14_48 = arith.constant 14 : index
    %218 = memref.load %arg3[%c14_48] : memref<20xf32, #tpu.memory_space<smem>>
    %219 = vector.broadcast %218 : f32 to vector<8x128xf32>
    %220 = arith.mulf %219, %3 : vector<8x128xf32>
    %221 = arith.addf %217, %220 : vector<8x128xf32>
    %c14_49 = arith.constant 14 : index
    %222 = memref.load %arg4[%c14_49] : memref<20xf32, #tpu.memory_space<smem>>
    %223 = vector.broadcast %222 : f32 to vector<8x128xf32>
    %224 = arith.addf %221, %223 : vector<8x128xf32>
    %225 = math.tanh %224 : vector<8x128xf32>
    %c14_50 = arith.constant 14 : index
    %226 = memref.load %arg5[%c14_50] : memref<20xf32, #tpu.memory_space<smem>>
    %227 = vector.broadcast %226 : f32 to vector<8x128xf32>
    %228 = arith.mulf %227, %225 : vector<8x128xf32>
    %229 = arith.addf %214, %228 : vector<8x128xf32>
    %c15 = arith.constant 15 : index
    %230 = memref.load %arg2[%c15] : memref<20xf32, #tpu.memory_space<smem>>
    %231 = vector.broadcast %230 : f32 to vector<8x128xf32>
    %232 = arith.mulf %231, %1 : vector<8x128xf32>
    %c15_51 = arith.constant 15 : index
    %233 = memref.load %arg3[%c15_51] : memref<20xf32, #tpu.memory_space<smem>>
    %234 = vector.broadcast %233 : f32 to vector<8x128xf32>
    %235 = arith.mulf %234, %3 : vector<8x128xf32>
    %236 = arith.addf %232, %235 : vector<8x128xf32>
    %c15_52 = arith.constant 15 : index
    %237 = memref.load %arg4[%c15_52] : memref<20xf32, #tpu.memory_space<smem>>
    %238 = vector.broadcast %237 : f32 to vector<8x128xf32>
    %239 = arith.addf %236, %238 : vector<8x128xf32>
    %240 = math.tanh %239 : vector<8x128xf32>
    %c15_53 = arith.constant 15 : index
    %241 = memref.load %arg5[%c15_53] : memref<20xf32, #tpu.memory_space<smem>>
    %242 = vector.broadcast %241 : f32 to vector<8x128xf32>
    %243 = arith.mulf %242, %240 : vector<8x128xf32>
    %244 = arith.addf %229, %243 : vector<8x128xf32>
    %c16 = arith.constant 16 : index
    %245 = memref.load %arg2[%c16] : memref<20xf32, #tpu.memory_space<smem>>
    %246 = vector.broadcast %245 : f32 to vector<8x128xf32>
    %247 = arith.mulf %246, %1 : vector<8x128xf32>
    %c16_54 = arith.constant 16 : index
    %248 = memref.load %arg3[%c16_54] : memref<20xf32, #tpu.memory_space<smem>>
    %249 = vector.broadcast %248 : f32 to vector<8x128xf32>
    %250 = arith.mulf %249, %3 : vector<8x128xf32>
    %251 = arith.addf %247, %250 : vector<8x128xf32>
    %c16_55 = arith.constant 16 : index
    %252 = memref.load %arg4[%c16_55] : memref<20xf32, #tpu.memory_space<smem>>
    %253 = vector.broadcast %252 : f32 to vector<8x128xf32>
    %254 = arith.addf %251, %253 : vector<8x128xf32>
    %255 = math.tanh %254 : vector<8x128xf32>
    %c16_56 = arith.constant 16 : index
    %256 = memref.load %arg5[%c16_56] : memref<20xf32, #tpu.memory_space<smem>>
    %257 = vector.broadcast %256 : f32 to vector<8x128xf32>
    %258 = arith.mulf %257, %255 : vector<8x128xf32>
    %259 = arith.addf %244, %258 : vector<8x128xf32>
    %c17 = arith.constant 17 : index
    %260 = memref.load %arg2[%c17] : memref<20xf32, #tpu.memory_space<smem>>
    %261 = vector.broadcast %260 : f32 to vector<8x128xf32>
    %262 = arith.mulf %261, %1 : vector<8x128xf32>
    %c17_57 = arith.constant 17 : index
    %263 = memref.load %arg3[%c17_57] : memref<20xf32, #tpu.memory_space<smem>>
    %264 = vector.broadcast %263 : f32 to vector<8x128xf32>
    %265 = arith.mulf %264, %3 : vector<8x128xf32>
    %266 = arith.addf %262, %265 : vector<8x128xf32>
    %c17_58 = arith.constant 17 : index
    %267 = memref.load %arg4[%c17_58] : memref<20xf32, #tpu.memory_space<smem>>
    %268 = vector.broadcast %267 : f32 to vector<8x128xf32>
    %269 = arith.addf %266, %268 : vector<8x128xf32>
    %270 = math.tanh %269 : vector<8x128xf32>
    %c17_59 = arith.constant 17 : index
    %271 = memref.load %arg5[%c17_59] : memref<20xf32, #tpu.memory_space<smem>>
    %272 = vector.broadcast %271 : f32 to vector<8x128xf32>
    %273 = arith.mulf %272, %270 : vector<8x128xf32>
    %274 = arith.addf %259, %273 : vector<8x128xf32>
    %c18 = arith.constant 18 : index
    %275 = memref.load %arg2[%c18] : memref<20xf32, #tpu.memory_space<smem>>
    %276 = vector.broadcast %275 : f32 to vector<8x128xf32>
    %277 = arith.mulf %276, %1 : vector<8x128xf32>
    %c18_60 = arith.constant 18 : index
    %278 = memref.load %arg3[%c18_60] : memref<20xf32, #tpu.memory_space<smem>>
    %279 = vector.broadcast %278 : f32 to vector<8x128xf32>
    %280 = arith.mulf %279, %3 : vector<8x128xf32>
    %281 = arith.addf %277, %280 : vector<8x128xf32>
    %c18_61 = arith.constant 18 : index
    %282 = memref.load %arg4[%c18_61] : memref<20xf32, #tpu.memory_space<smem>>
    %283 = vector.broadcast %282 : f32 to vector<8x128xf32>
    %284 = arith.addf %281, %283 : vector<8x128xf32>
    %285 = math.tanh %284 : vector<8x128xf32>
    %c18_62 = arith.constant 18 : index
    %286 = memref.load %arg5[%c18_62] : memref<20xf32, #tpu.memory_space<smem>>
    %287 = vector.broadcast %286 : f32 to vector<8x128xf32>
    %288 = arith.mulf %287, %285 : vector<8x128xf32>
    %289 = arith.addf %274, %288 : vector<8x128xf32>
    %c19 = arith.constant 19 : index
    %290 = memref.load %arg2[%c19] : memref<20xf32, #tpu.memory_space<smem>>
    %291 = vector.broadcast %290 : f32 to vector<8x128xf32>
    %292 = arith.mulf %291, %1 : vector<8x128xf32>
    %c19_63 = arith.constant 19 : index
    %293 = memref.load %arg3[%c19_63] : memref<20xf32, #tpu.memory_space<smem>>
    %294 = vector.broadcast %293 : f32 to vector<8x128xf32>
    %295 = arith.mulf %294, %3 : vector<8x128xf32>
    %296 = arith.addf %292, %295 : vector<8x128xf32>
    %c19_64 = arith.constant 19 : index
    %297 = memref.load %arg4[%c19_64] : memref<20xf32, #tpu.memory_space<smem>>
    %298 = vector.broadcast %297 : f32 to vector<8x128xf32>
    %299 = arith.addf %296, %298 : vector<8x128xf32>
    %300 = math.tanh %299 : vector<8x128xf32>
    %c19_65 = arith.constant 19 : index
    %301 = memref.load %arg5[%c19_65] : memref<20xf32, #tpu.memory_space<smem>>
    %302 = vector.broadcast %301 : f32 to vector<8x128xf32>
    %303 = arith.mulf %302, %300 : vector<8x128xf32>
    %304 = arith.addf %289, %303 : vector<8x128xf32>
    %c0_66 = arith.constant 0 : index
    %305 = memref.load %arg6[%c0_66] : memref<1xf32, #tpu.memory_space<smem>>
    %306 = vector.broadcast %305 : f32 to vector<8x128xf32>
    %307 = arith.addf %304, %306 : vector<8x128xf32>
    %c0_67 = arith.constant 0 : index
    %c0_68 = arith.constant 0 : index
    %308 = vector.load %arg7[%c0_67, %c0_68] : memref<8x128xf32, #tpu.memory_space<vmem>>, vector<8x128xf32>
    tpu.vector_store %arg7[%c0_67, %c0_68], %307 {strides = array<i32>} : memref<8x128xf32, #tpu.memory_space<vmem>>, vector<8x128xf32>,
    return
  }
  func.func @transform_0(%arg0: i32) -> (i32, i32, i32) {
    %c0_i32 = arith.constant 0 : i32
    %c0_i32_0 = arith.constant 0 : i32
    %c0_i32_1 = arith.constant 0 : i32
    return %c0_i32, %c0_i32_0, %arg0 : i32, i32, i32
  }
  func.func @transform_1(%arg0: i32) -> i32 {
    %c0_i32 = arith.constant 0 : i32
    %c0_i32_0 = arith.constant 0 : i32
    return %c0_i32 : i32
  }
  func.func @transform_2(%arg0: i32) -> i32 {
    %c0_i32 = arith.constant 0 : i32
    %c0_i32_0 = arith.constant 0 : i32
    return %c0_i32 : i32
  }
  func.func @transform_3(%arg0: i32) -> i32 {
    %c0_i32 = arith.constant 0 : i32
    %c0_i32_0 = arith.constant 0 : i32
    return %c0_i32 : i32
  }
  func.func @transform_4(%arg0: i32) -> i32 {
    %c0_i32 = arith.constant 0 : i32
    %c0_i32_0 = arith.constant 0 : i32
    return %c0_i32 : i32
  }
  func.func @transform_5(%arg0: i32) -> i32 {
    %c0_i32 = arith.constant 0 : i32
    %c0_i32_0 = arith.constant 0 : i32
    return %c0_i32 : i32
  }
  func.func @transform_6(%arg0: i32) -> (i32, i32) {
    %c0_i32 = arith.constant 0 : i32
    %c0_i32_0 = arith.constant 0 : i32
    return %c0_i32, %arg0 : i32, i32
  }
}

</mosaic_0001>

<bundles_post_ra>
// kernel: tpu_custom_call.1
= control target key start
LH: loop header
LB: loop body
LE: loop exit
PB: predicated region body
PF: predicated region fallthrough
CT: control target
= control target key end

     0   :  { %12 = vsyncpa [#allocation4], 0  ;;  %s835_s0 = inlined_call_operand.hbm [shape: f32[2,8,128], index: 0, kind: input, shape index: {}]   ;;  %s836_s1 = inlined_call_operand.vmem [shape: f32[20], index: 1, kind: input, shape index: {}]   ;;  %s837_s2 = inlined_call_operand.vmem [shape: f32[20], index: 2, kind: input, shape index: {}]   ;;  %s838_s3 = inlined_call_operand.vmem [shape: f32[20], index: 3, kind: input, shape index: {}]   ;;  %s839_s4 = inlined_call_operand.vmem [shape: f32[20], index: 4, kind: input, shape index: {}]   ;;  %s840_s5 = inlined_call_operand.<no memory space> [shape: f32[1], index: 5, kind: input, shape index: {}]   ;;  %s841_s6 = inlined_call_operand.hbm [shape: f32[8,128], index: 6, kind: output, shape index: {}]  }
   0x1   :  { %13 = vsyncpa [#allocation6], 0 }
   0x2   :  { %14 = vsyncpa [#allocation9], 0 }
   0x3   :  { %15 = vsyncpa [#allocation12], 0  ;;  %s45_s23 = sshll.u32 %s837_s2, 4  ;;  %s46_s23 = int_to_ptr.vmem [resolvable:$true] %s45_s23 }
   0x4   :  { %16 = vsyncpa [#allocation5], 0  ;;  %s536_s24 = scalar_lea.vmem %s46_s23, 16  ;;  %p541_p1 = scmp.lt.s32.totalorder %s46_s23, %s46_s23 }
   0x5   :  { %p537_p0 = scmp.ne.s32.totalorder %s46_s23, %s536_s24  ;;  %p542_p2 = scmp.lt.s32.totalorder %s536_s24, %s536_s24 }
   0x7   :  { %p543_p3 = por %p542_p2, %p541_p1 }
   0x9   :  { %p544_p4 = pnand %p543_p3, %p537_p0 }
   0xb   :  { %547 = shalt.err (!%p544_p4)
}
   0xc   :  { %s634_s25 = smov [#allocation8]   ;;  %s635_s26 = smov [#allocation3]  }
   0xd   :  { %48 = dma.vmem_to_smem %s46_s23, 16, %s634_s25, [#allocation9]  }
   0xe   :  { %s22_s27 = sshll.u32 %s635_s26, 4  ;;  %s23_s27 = int_to_ptr.vmem [resolvable:$true] %s22_s27 }
   0xf   :  { %s556_s28 = scalar_lea.vmem %s23_s27, 256  ;;  %p561_p6 = scmp.lt.s32.totalorder %s23_s27, %s23_s27 }
  0x10   :  { %p557_p5 = scmp.ne.s32.totalorder %s23_s27, %s556_s28  ;;  %p562_p7 = scmp.lt.s32.totalorder %s556_s28, %s556_s28 }
  0x12   :  { %p563_p8 = por %p562_p7, %p561_p6 }
  0x14   :  { %p564_p9 = pnand %p563_p8, %p557_p5 }
  0x16   :  { %567 = shalt.err (!%p564_p9)
}
  0x17   :  { %s636_s2 = smov 128   ;;  %s637_s29 = smov 8  }
  0x18   :  { %28 = dma.hbm_to_vmem [thread:$0]  %s835_s0, 256, %s23_s27, [#allocation4], %s636_s2, %s636_s2, %s637_s29  }
  0x19   :  { %s35_s10 = sshll.u32 %s836_s1, 4  ;;  %s55_s13 = sshll.u32 %s838_s3, 4  ;;  %s36_s10 = int_to_ptr.vmem [resolvable:$true] %s35_s10  ;;  %s56_s13 = int_to_ptr.vmem [resolvable:$true] %s55_s13 }
  0x1a   :  { %s568_s14 = scalar_lea.vmem %s36_s10, 16  ;;  %p573_p11 = scmp.lt.s32.totalorder %s36_s10, %s36_s10 }
  0x1b   :  { %p569_p10 = scmp.ne.s32.totalorder %s36_s10, %s568_s14  ;;  %p574_p12 = scmp.lt.s32.totalorder %s568_s14, %s568_s14 }
  0x1d   :  { %p575_p13 = por %p574_p12, %p573_p11 }
  0x1f   :  { %p576_p0 = pnand %p575_p13, %p569_p10 }
  0x21   :  { %579 = shalt.err (!%p576_p0)
}
  0x22   :  { %s638_s15 = smov [#allocation7]   ;;  %s580_s0 = scalar_lea.vmem %s56_s13, 16 }
  0x23   :  { %38 = dma.vmem_to_smem %s36_s10, 16, %s638_s15, [#allocation6]  }
  0x24   :  { %p581_p1 = scmp.ne.s32.totalorder %s56_s13, %s580_s0  ;;  %p585_p2 = scmp.lt.s32.totalorder %s56_s13, %s56_s13 }
  0x25   :  { %p586_p3 = scmp.lt.s32.totalorder %s580_s0, %s580_s0 }
  0x27   :  { %p587_p4 = por %p586_p3, %p585_p2 }
  0x29   :  { %p588_p5 = pnand %p587_p4, %p581_p1 }
  0x2b   :  { %591 = shalt.err (!%p588_p5)
}
  0x2c   :  { %s639_s1 = smov [#allocation10]   ;;  %s65_s17 = sshll.u32 %s839_s4, 4  ;;  %s66_s17 = int_to_ptr.vmem [resolvable:$true] %s65_s17 }
  0x2d   :  { %58 = dma.vmem_to_smem %s56_s13, 16, %s639_s1, [#allocation9]  }
  0x2e   :  { %s592_s18 = scalar_lea.vmem %s66_s17, 16  ;;  %p597_p7 = scmp.lt.s32.totalorder %s66_s17, %s66_s17 }
  0x2f   :  { %p593_p6 = scmp.ne.s32.totalorder %s66_s17, %s592_s18  ;;  %p598_p8 = scmp.lt.s32.totalorder %s592_s18, %s592_s18 }
  0x31   :  { %p599_p9 = por %p598_p8, %p597_p7 }
  0x33   :  { %p600_p10 = pnand %p599_p9, %p593_p6 }
  0x35   :  { %603 = shalt.err (!%p600_p10)
}
  0x36   :  { %s640_s19 = smov [#allocation11]  }
  0x37   :  { %68 = dma.vmem_to_smem %s66_s17, 16, %s640_s19, [#allocation12]  }
  0x38   :  { %624 = dma.done.wait [#allocation4], 256  }
  0x39   :  { %625 = vsyncadd [#allocation4], 4294967040 }
  0x3a   :  { %626 = dma.done.wait [#allocation6], 16  }
  0x3b   :  { %627 = vsyncadd [#allocation6], 4294967280 }
  0x3c   :  { %628 = dma.done.wait [#allocation9], 32  }
  0x3d   :  { %629 = vsyncadd [#allocation9], 4294967264 }
  0x3e   :  { %630 = dma.done.wait [#allocation12], 16  }
  0x3f   :  { %631 = vsyncadd [#allocation12], 4294967280 }
  0x40   :  { %86 = sfence }
  0x41   :  { %s90_s4 = sld [smem:[#allocation7]]  ;;  %v692_v0 = vld [vmem:[#allocation3] sm:$0xff]  ;;  %v694_v1 = vld [vmem:[#allocation3 + $0x8] sm:$0xff] }
  0x42   :  { %s93_s20 = sld [smem:[#allocation8]] }
  0x43   :  { %s97_s21 = sld [smem:[#allocation10]] }
  0x44   :  { %s412_s22 = sld [smem:[#allocation7 + $0x1]] }
  0x45   :  { %s413_s23 = sld [smem:[#allocation8 + $0x1]] }
  0x46   :  { %s414_s24 = sld [smem:[#allocation10 + $0x1]] }
  0x47   :  { %v91_v2 = vstv %s90_s4  ;;  %s416_s25 = sld [smem:[#allocation7 + $0x2]] }
  0x48   :  { %v92_v3 = vmul.f32 %v91_v2, %v692_v0  ;;  %v94_v4 = vstv %s93_s20  ;;  %s417_s26 = sld [smem:[#allocation8 + $0x2]] }
  0x49   :  { %v95_v5 = vmul.f32 %v94_v4, %v694_v1  ;;  %v98_v6 = vstv %s97_s21  ;;  %s418_s27 = sld [smem:[#allocation10 + $0x2]] }
  0x4a   :  { %v106_v8 = vstv %s412_s22  ;;  %s420_s28 = sld [smem:[#allocation7 + $0x3]] }
  0x4b   :  { %v96_v7 = vadd.f32 %v95_v5, %v92_v3  ;;  %v107_v9 = vmul.f32 %v106_v8, %v692_v0  ;;  %v109_v10 = vstv %s413_s23  ;;  %s421_s2 = sld [smem:[#allocation8 + $0x3]] }
  0x4c   :  { %v110_v12 = vmul.f32 %v109_v10, %v694_v1  ;;  %v113_v13 = vstv %s414_s24  ;;  %s422_s29 = sld [smem:[#allocation10 + $0x3]] }
  0x4d   :  { %v99_v11 = vadd.f32 %v98_v6, %v96_v7  ;;  %v121_v15 = vstv %s416_s25  ;;  %s700_s30 = sld [smem:[#allocation11]] }
  0x4e   :  { %v111_v14 = vadd.f32 %v110_v12, %v107_v9  ;;  %v122_v16 = vmul.f32 %v121_v15, %v692_v0  ;;  %v124_v17 = vstv %s417_s26  ;;  %s424_s7 = sld [smem:[#allocation7 + $0x4]] }
  0x4f   :  { %496 = vtanh.f32 %v99_v11  ;;  %v125_v19 = vmul.f32 %v124_v17, %v694_v1  ;;  %v128_v20 = vstv %s418_s27  ;;  %s425_s8 = sld [smem:[#allocation8 + $0x4]] }
  0x50   :  { %v114_v18 = vadd.f32 %v113_v13, %v111_v14  ;;  %v136_v22 = vstv %s420_s28  ;;  %s704_s9 = sld [smem:[#allocation10 + $0x4]] }
  0x51   :  { %v126_v21 = vadd.f32 %v125_v19, %v122_v16  ;;  %s706_s10 = sld [smem:[#allocation11 + $0x1]]  ;;  %v137_v23 = vmul.f32 %v136_v22, %v692_v0  ;;  %v139_v24 = vstv %s421_s2 }
  0x52   :  { %498 = vtanh.f32 %v114_v18  ;;  %v140_v26 = vmul.f32 %v139_v24, %v694_v1  ;;  %s428_s11 = sld [smem:[#allocation7 + $0x5]]  ;;  %v143_v27 = vstv %s422_s29 }
  0x53   :  { %v129_v25 = vadd.f32 %v128_v20, %v126_v21  ;;  %s429_s12 = sld [smem:[#allocation8 + $0x5]]  ;;  %v102_v38 = vstv %s700_s30 }
  0x54   :  { %v141_v28 = vadd.f32 %v140_v26, %v137_v23  ;;  %v151_v29 = vstv %s424_s7  ;;  %s710_s13 = sld [smem:[#allocation10 + $0x5]] }
  0x55   :  { %500 = vtanh.f32 %v129_v25  ;;  %s712_s14 = sld [smem:[#allocation11 + $0x2]]  ;;  %v152_v30 = vmul.f32 %v151_v29, %v692_v0  ;;  %v154_v31 = vstv %s425_s8 }
  0x56   :  { %v144_v32 = vadd.f32 %v143_v27, %v141_v28  ;;  %v155_v33 = vmul.f32 %v154_v31, %v694_v1  ;;  %s432_s15 = sld [smem:[#allocation7 + $0x6]]  ;;  %v158_v34 = vstv %s704_s9 }
  0x57   :  { %s433_s0 = sld [smem:[#allocation8 + $0x6]]  ;;  %v117_v43 = vstv %s706_s10 }
  0x58   :  { %502 = vtanh.f32 %v144_v32  ;;  %v156_v35 = vadd.f32 %v155_v33, %v152_v30  ;;  %v166_v36 = vstv %s428_s11  ;;  %s717_s1 = sld [smem:[#allocation10 + $0x6]] }
  0x59   :  { %s720_s3 = sld [smem:[#allocation11 + $0x3]]  ;;  %v167_v39 = vmul.f32 %v166_v36, %v692_v0  ;;  %v169_v40 = vstv %s429_s12 }
  0x5a   :  { %v159_v41 = vadd.f32 %v158_v34, %v156_v35  ;;  %v170_v42 = vmul.f32 %v169_v40, %v694_v1  ;;  %s436_s16 = sld [smem:[#allocation7 + $0x7]]  ;;  %v173_v44 = vstv %s710_s13 }
  0x5b   :  { %s437_s17 = sld [smem:[#allocation8 + $0x7]]  ;;  %v132_v54 = vstv %s712_s14 }
  0x5c   :  { %v497_v37 = vpop.eup %496  ;;  %504 = vtanh.f32 %v159_v41  ;;  %v171_v46 = vadd.f32 %v170_v42, %v167_v39  ;;  %v181_v47 = vstv %s432_s15  ;;  %s726_s18 = sld [smem:[#allocation10 + $0x7]] }
  0x5d   :  { %v103_v45 = vmul.f32 %v497_v37, %v102_v38  ;;  %s728_s19 = sld [smem:[#allocation11 + $0x4]]  ;;  %v182_v49 = vmul.f32 %v181_v47, %v692_v0  ;;  %v184_v50 = vstv %s433_s0 }
  0x5e   :  { %v174_v52 = vadd.f32 %v173_v44, %v171_v46  ;;  %v185_v53 = vmul.f32 %v184_v50, %v694_v1  ;;  %s440_s4 = sld [smem:[#allocation7 + $0x8]]  ;;  %v188_v55 = vstv %s717_s1 }
  0x5f   :  { %v499_v48 = vpop.eup %498  ;;  %s441_s20 = sld [smem:[#allocation8 + $0x8]]  ;;  %v147_v3 = vstv %s720_s3 }
  0x60   :  { %v118_v51 = vmul.f32 %v499_v48, %v117_v43  ;;  %506 = vtanh.f32 %v174_v52  ;;  %v186_v57 = vadd.f32 %v185_v53, %v182_v49  ;;  %v196_v58 = vstv %s436_s16  ;;  %s734_s21 = sld [smem:[#allocation10 + $0x8]] }
  0x61   :  { %s736_s22 = sld [smem:[#allocation11 + $0x5]]  ;;  %v197_v60 = vmul.f32 %v196_v58, %v692_v0  ;;  %v199_v61 = vstv %s437_s17 }
  0x62   :  { %v119_v56 = vadd.f32 %v118_v51, %v103_v45  ;;  %v501_v59 = vpop.eup %500  ;;  %v189_v63 = vadd.f32 %v188_v55, %v186_v57  ;;  %v200_v2 = vmul.f32 %v199_v61, %v694_v1  ;;  %s444_s23 = sld [smem:[#allocation7 + $0x9]]  ;;  %v203_v4 = vstv %s726_s18 }
  0x63   :  { %v133_v62 = vmul.f32 %v501_v59, %v132_v54  ;;  %s445_s24 = sld [smem:[#allocation8 + $0x9]]  ;;  %v162_v14 = vstv %s728_s19 }
  0x64   :  { %508 = vtanh.f32 %v189_v63  ;;  %v201_v6 = vadd.f32 %v200_v2, %v197_v60  ;;  %v211_v7 = vstv %s440_s4  ;;  %s742_s25 = sld [smem:[#allocation10 + $0x9]] }
  0x65   :  { %v134_v5 = vadd.f32 %v133_v62, %v119_v56  ;;  %v503_v8 = vpop.eup %502  ;;  %s744_s26 = sld [smem:[#allocation11 + $0x6]]  ;;  %v212_v9 = vmul.f32 %v211_v7, %v692_v0  ;;  %v214_v10 = vstv %s441_s20 }
  0x66   :  { %v148_v11 = vmul.f32 %v503_v8, %v147_v3  ;;  %v204_v12 = vadd.f32 %v203_v4, %v201_v6  ;;  %v215_v13 = vmul.f32 %v214_v10, %v694_v1  ;;  %s448_s27 = sld [smem:[#allocation7 + $0xa]]  ;;  %v218_v15 = vstv %s734_s21 }
  0x67   :  { %s449_s28 = sld [smem:[#allocation8 + $0xa]]  ;;  %v177_v25 = vstv %s736_s22 }
  0x68   :  { %v149_v16 = vadd.f32 %v148_v11, %v134_v5  ;;  %510 = vtanh.f32 %v204_v12  ;;  %v216_v17 = vadd.f32 %v215_v13, %v212_v9  ;;  %v226_v18 = vstv %s444_s23  ;;  %s750_s2 = sld [smem:[#allocation10 + $0xa]] }
  0x69   :  { %v505_v19 = vpop.eup %504  ;;  %s752_s29 = sld [smem:[#allocation11 + $0x7]]  ;;  %v227_v20 = vmul.f32 %v226_v18, %v692_v0  ;;  %v229_v21 = vstv %s445_s24 }
  0x6a   :  { %v163_v22 = vmul.f32 %v505_v19, %v162_v14  ;;  %v219_v23 = vadd.f32 %v218_v15, %v216_v17  ;;  %v230_v24 = vmul.f32 %v229_v21, %v694_v1  ;;  %s452_s30 = sld [smem:[#allocation7 + $0xb]]  ;;  %v233_v26 = vstv %s742_s25 }
  0x6b   :  { %s453_s7 = sld [smem:[#allocation8 + $0xb]]  ;;  %v192_v36 = vstv %s744_s26 }
  0x6c   :  { %v164_v27 = vadd.f32 %v163_v22, %v149_v16  ;;  %512 = vtanh.f32 %v219_v23  ;;  %v231_v28 = vadd.f32 %v230_v24, %v227_v20  ;;  %v241_v29 = vstv %s448_s27  ;;  %s758_s8 = sld [smem:[#allocation10 + $0xb]] }
  0x6d   :  { %v507_v30 = vpop.eup %506  ;;  %s760_s9 = sld [smem:[#allocation11 + $0x8]]  ;;  %v242_v31 = vmul.f32 %v241_v29, %v692_v0  ;;  %v244_v32 = vstv %s449_s28 }
  0x6e   :  { %v178_v33 = vmul.f32 %v507_v30, %v177_v25  ;;  %v234_v34 = vadd.f32 %v233_v26, %v231_v28  ;;  %v245_v35 = vmul.f32 %v244_v32, %v694_v1  ;;  %s456_s10 = sld [smem:[#allocation7 + $0xc]]  ;;  %v248_v37 = vstv %s750_s2 }
  0x6f   :  { %s457_s11 = sld [smem:[#allocation8 + $0xc]]  ;;  %v207_v47 = vstv %s752_s29 }
  0x70   :  { %v179_v38 = vadd.f32 %v178_v33, %v164_v27  ;;  %514 = vtanh.f32 %v234_v34  ;;  %v246_v39 = vadd.f32 %v245_v35, %v242_v31  ;;  %v256_v40 = vstv %s452_s30  ;;  %s766_s12 = sld [smem:[#allocation10 + $0xc]] }
  0x71   :  { %v509_v41 = vpop.eup %508  ;;  %s768_s13 = sld [smem:[#allocation11 + $0x9]]  ;;  %v257_v42 = vmul.f32 %v256_v40, %v692_v0  ;;  %v259_v43 = vstv %s453_s7 }
  0x72   :  { %v193_v44 = vmul.f32 %v509_v41, %v192_v36  ;;  %v249_v45 = vadd.f32 %v248_v37, %v246_v39  ;;  %v260_v46 = vmul.f32 %v259_v43, %v694_v1  ;;  %s460_s14 = sld [smem:[#allocation7 + $0xd]]  ;;  %v263_v48 = vstv %s758_s8 }
  0x73   :  { %s461_s15 = sld [smem:[#allocation8 + $0xd]]  ;;  %v222_v58 = vstv %s760_s9 }
  0x74   :  { %v194_v49 = vadd.f32 %v193_v44, %v179_v38  ;;  %516 = vtanh.f32 %v249_v45  ;;  %v261_v50 = vadd.f32 %v260_v46, %v257_v42  ;;  %v271_v51 = vstv %s456_s10  ;;  %s774_s0 = sld [smem:[#allocation10 + $0xd]] }
  0x75   :  { %v511_v52 = vpop.eup %510  ;;  %s776_s1 = sld [smem:[#allocation11 + $0xa]]  ;;  %v272_v53 = vmul.f32 %v271_v51, %v692_v0  ;;  %v274_v54 = vstv %s457_s11 }
  0x76   :  { %v208_v55 = vmul.f32 %v511_v52, %v207_v47  ;;  %v264_v56 = vadd.f32 %v263_v48, %v261_v50  ;;  %v275_v57 = vmul.f32 %v274_v54, %v694_v1  ;;  %s464_s3 = sld [smem:[#allocation7 + $0xe]]  ;;  %v278_v59 = vstv %s766_s12 }
  0x77   :  { %s465_s16 = sld [smem:[#allocation8 + $0xe]]  ;;  %v237_v7 = vstv %s768_s13 }
  0x78   :  { %v209_v60 = vadd.f32 %v208_v55, %v194_v49  ;;  %518 = vtanh.f32 %v264_v56  ;;  %v276_v61 = vadd.f32 %v275_v57, %v272_v53  ;;  %v286_v62 = vstv %s460_s14  ;;  %s782_s17 = sld [smem:[#allocation10 + $0xe]] }
  0x79   :  { %v513_v63 = vpop.eup %512  ;;  %s784_s18 = sld [smem:[#allocation11 + $0xb]]  ;;  %v287_v2 = vmul.f32 %v286_v62, %v692_v0  ;;  %v289_v3 = vstv %s461_s15 }
  0x7a   :  { %v223_v4 = vmul.f32 %v513_v63, %v222_v58  ;;  %v279_v5 = vadd.f32 %v278_v59, %v276_v61  ;;  %v290_v6 = vmul.f32 %v289_v3, %v694_v1  ;;  %s468_s19 = sld [smem:[#allocation7 + $0xf]]  ;;  %v293_v8 = vstv %s774_s0 }
  0x7b   :  { %s469_s4 = sld [smem:[#allocation8 + $0xf]]  ;;  %v252_v18 = vstv %s776_s1 }
  0x7c   :  { %v224_v9 = vadd.f32 %v223_v4, %v209_v60  ;;  %520 = vtanh.f32 %v279_v5  ;;  %v291_v10 = vadd.f32 %v290_v6, %v287_v2  ;;  %v301_v11 = vstv %s464_s3  ;;  %s790_s20 = sld [smem:[#allocation10 + $0xf]]  ;;  %s641_s3 = smov [#allocation13]  }
  0x7d   :  { %v515_v12 = vpop.eup %514  ;;  %s792_s21 = sld [smem:[#allocation11 + $0xc]]  ;;  %v302_v13 = vmul.f32 %v301_v11, %v692_v0  ;;  %v304_v14 = vstv %s465_s16  ;;  %s400_s16 = sshll.u32 %s641_s3, 4  ;;  %s401_s16 = int_to_ptr.vmem [resolvable:$true] %s400_s16 }
  0x7e   :  { %v238_v15 = vmul.f32 %v515_v12, %v237_v7  ;;  %v294_v16 = vadd.f32 %v293_v8, %v291_v10  ;;  %v305_v17 = vmul.f32 %v304_v14, %v694_v1  ;;  %s472_s22 = sld [smem:[#allocation7 + $0x10]]  ;;  %v308_v19 = vstv %s782_s17  ;;  %s604_s17 = scalar_lea.vmem %s401_s16, 128 }
  0x7f   :  { %s473_s23 = sld [smem:[#allocation8 + $0x10]]  ;;  %v267_v29 = vstv %s784_s18  ;;  %p605_p11 = scmp.ne.s32.totalorder %s401_s16, %s604_s17 }
  0x80   :  { %v239_v20 = vadd.f32 %v238_v15, %v224_v9  ;;  %522 = vtanh.f32 %v294_v16  ;;  %v306_v21 = vadd.f32 %v305_v17, %v302_v13  ;;  %v316_v22 = vstv %s468_s19  ;;  %s798_s24 = sld [smem:[#allocation10 + $0x10]]  ;;  %p609_p12 = scmp.lt.s32.totalorder %s401_s16, %s401_s16 }
  0x81   :  { %v517_v23 = vpop.eup %516  ;;  %s800_s25 = sld [smem:[#allocation11 + $0xd]]  ;;  %v317_v24 = vmul.f32 %v316_v22, %v692_v0  ;;  %v319_v25 = vstv %s469_s4  ;;  %p610_p13 = scmp.lt.s32.totalorder %s604_s17, %s604_s17 }
  0x82   :  { %v253_v26 = vmul.f32 %v517_v23, %v252_v18  ;;  %v309_v27 = vadd.f32 %v308_v19, %v306_v21  ;;  %v320_v28 = vmul.f32 %v319_v25, %v694_v1  ;;  %s476_s26 = sld [smem:[#allocation7 + $0x11]]  ;;  %v323_v30 = vstv %s790_s20 }
  0x83   :  { %s477_s27 = sld [smem:[#allocation8 + $0x11]]  ;;  %v282_v40 = vstv %s792_s21  ;;  %p611_p0 = por %p610_p13, %p609_p12 }
  0x84   :  { %v254_v31 = vadd.f32 %v253_v26, %v239_v20  ;;  %524 = vtanh.f32 %v309_v27  ;;  %v321_v32 = vadd.f32 %v320_v28, %v317_v24  ;;  %v331_v33 = vstv %s472_s22  ;;  %s806_s28 = sld [smem:[#allocation10 + $0x11]] }
  0x85   :  { %v519_v34 = vpop.eup %518  ;;  %s808_s2 = sld [smem:[#allocation11 + $0xe]]  ;;  %v332_v35 = vmul.f32 %v331_v33, %v692_v0  ;;  %v334_v36 = vstv %s473_s23  ;;  %p612_p1 = pnand %p611_p0, %p605_p11 }
  0x86   :  { %v268_v37 = vmul.f32 %v519_v34, %v267_v29  ;;  %v324_v38 = vadd.f32 %v323_v30, %v321_v32  ;;  %v335_v39 = vmul.f32 %v334_v36, %v694_v1  ;;  %s480_s29 = sld [smem:[#allocation7 + $0x12]]  ;;  %v338_v41 = vstv %s798_s24 }
  0x87   :  { %s481_s30 = sld [smem:[#allocation8 + $0x12]]  ;;  %v297_v51 = vstv %s800_s25  ;;  %v391_v32 = vstv %s840_s5 }
  0x88   :  { %v269_v42 = vadd.f32 %v268_v37, %v254_v31  ;;  %526 = vtanh.f32 %v324_v38  ;;  %v336_v43 = vadd.f32 %v335_v39, %v332_v35  ;;  %v346_v44 = vstv %s476_s26  ;;  %s814_s7 = sld [smem:[#allocation10 + $0x12]] }
  0x89   :  { %v521_v45 = vpop.eup %520  ;;  %s816_s8 = sld [smem:[#allocation11 + $0xf]]  ;;  %v347_v46 = vmul.f32 %v346_v44, %v692_v0  ;;  %v349_v47 = vstv %s477_s27 }
  0x8a   :  { %v283_v48 = vmul.f32 %v521_v45, %v282_v40  ;;  %v339_v49 = vadd.f32 %v338_v41, %v336_v43  ;;  %v350_v50 = vmul.f32 %v349_v47, %v694_v1  ;;  %s484_s9 = sld [smem:[#allocation7 + $0x13]]  ;;  %v353_v52 = vstv %s806_s28 }
  0x8b   :  { %s485_s10 = sld [smem:[#allocation8 + $0x13]]  ;;  %v312_v62 = vstv %s808_s2 }
  0x8c   :  { %v284_v53 = vadd.f32 %v283_v48, %v269_v42  ;;  %528 = vtanh.f32 %v339_v49  ;;  %v351_v54 = vadd.f32 %v350_v50, %v347_v46  ;;  %v361_v55 = vstv %s480_s29  ;;  %s486_s11 = sld [smem:[#allocation10 + $0x13]] }
  0x8d   :  { %v523_v56 = vpop.eup %522  ;;  %v362_v57 = vmul.f32 %v361_v55, %v692_v0  ;;  %v364_v58 = vstv %s481_s30  ;;  %s475_s12 = sld [smem:[#allocation11 + $0x10]] }
  0x8e   :  { %v298_v59 = vmul.f32 %v523_v56, %v297_v51  ;;  %v354_v60 = vadd.f32 %v353_v52, %v351_v54  ;;  %v365_v61 = vmul.f32 %v364_v58, %v694_v1  ;;  %v368_v63 = vstv %s814_s7  ;;  %s479_s13 = sld [smem:[#allocation11 + $0x11]] }
  0x8f   :  { %v327_v11 = vstv %s816_s8  ;;  %s483_s14 = sld [smem:[#allocation11 + $0x12]] }
  0x90   :  { %v299_v2 = vadd.f32 %v298_v59, %v284_v53  ;;  %530 = vtanh.f32 %v354_v60  ;;  %v366_v3 = vadd.f32 %v365_v61, %v362_v57  ;;  %v376_v4 = vstv %s484_s9  ;;  %s487_s15 = sld [smem:[#allocation11 + $0x13]] }
  0x91   :  { %v525_v5 = vpop.eup %524  ;;  %v377_v6 = vmul.f32 %v376_v4, %v692_v0  ;;  %v379_v7 = vstv %s485_s10 }
  0x92   :  { %v313_v8 = vmul.f32 %v525_v5, %v312_v62  ;;  %v369_v9 = vadd.f32 %v368_v63, %v366_v3  ;;  %v380_v10 = vmul.f32 %v379_v7, %v694_v1  ;;  %v383_v12 = vstv %s486_s11 }
  0x93   :  { %v342_v18 = vstv %s475_s12 }
  0x94   :  { %v314_v13 = vadd.f32 %v313_v8, %v299_v2  ;;  %532 = vtanh.f32 %v369_v9  ;;  %v381_v14 = vadd.f32 %v380_v10, %v377_v6  ;;  %v357_v21 = vstv %s479_s13 }
  0x95   :  { %v527_v15 = vpop.eup %526  ;;  %v372_v24 = vstv %s483_s14 }
  0x96   :  { %v328_v16 = vmul.f32 %v527_v15, %v327_v11  ;;  %v384_v17 = vadd.f32 %v383_v12, %v381_v14  ;;  %v387_v28 = vstv %s487_s15 }
  0x98   :  { %v329_v19 = vadd.f32 %v328_v16, %v314_v13  ;;  %534 = vtanh.f32 %v384_v17 }
  0x99   :  { %v529_v20 = vpop.eup %528 }
  0x9a   :  { %v343_v0 = vmul.f32 %v529_v20, %v342_v18 }
  0x9c   :  { %v344_v22 = vadd.f32 %v343_v0, %v329_v19 }
  0x9d   :  { %v531_v23 = vpop.eup %530 }
  0x9e   :  { %v358_v1 = vmul.f32 %v531_v23, %v357_v21 }
  0xa0   :  { %v359_v25 = vadd.f32 %v358_v1, %v344_v22 }
  0xa1   :  { %v533_v26 = vpop.eup %532 }
  0xa2   :  { %v373_v27 = vmul.f32 %v533_v26, %v372_v24 }
  0xa4   :  { %v374_v29 = vadd.f32 %v373_v27, %v359_v25 }
  0xa5   :  { %v535_v30 = vpop.eup %534 }
  0xa6   :  { %v388_v31 = vmul.f32 %v535_v30, %v387_v28 }
  0xa8   :  { %v389_v33 = vadd.f32 %v388_v31, %v374_v29 }
  0xaa   :  { %v392_v34 = vadd.f32 %v391_v32, %v389_v33 }
  0xac   :  { %393 = vst [vmem:[#allocation13] sm:$0xff] %v392_v34 }
  0xad   :  { %615 = shalt.err (!%p612_p1)
}
  0xae   :  { %403 = dma.vmem_to_hbm [thread:$0]  %s401_s16, 128, %s841_s6, [#allocation5]  }
  0xaf   :  { %632 = dma.done.wait [#allocation5], 128  }
  0xb0   :  { %633 = vsyncadd [#allocation5], 4294967168 }
  0xb1   :  { %407 = vsyncpa [#allocation4], 1 }
  0xb2   :  { %408 = vsyncpa [#allocation5], 1 }
  0xb3   :  { %409 = vsyncpa [#allocation6], 1 }
  0xb4   :  { %410 = vsyncpa [#allocation9], 1 }
  0xb5   :  { %411 = vsyncpa [#allocation12], 1 }

</bundles_post_ra>
